<compile_context>
chip_gen: v7x
topology: tpu7x:2x2x1
jax: 0.10.0
libtpu: 0.0.40
codegen_flags: <defaults>
</compile_context>

<pallas_src>
import math
import functools

import jax
import jax.numpy as jnp
import numpy as np
from jax.experimental import pallas as pl
from jax.experimental.pallas import tpu as pltpu


def _stress_attention_kernel(x_ref, xh_ref, wq_ref, wk_ref, wv_ref,
                             bq_ref, bk_ref, bv_ref, wout_ref, bout_ref,
                             wt_ref, o_ref, *, batch, seq_len, num_heads, head_dim):
    """Single-invocation kernel: whole (N, L, E) problem resident in VMEM.

    x_ref    : (N*L, E)        flattened activations (threat matmul / output shape)
    xh_ref   : (N*H, L, E)     activations replicated per head (batched projections)
    wq/wk/wv : (N*H, E, hd)    per-head in-projection weight slabs (pre-transposed)
    bq/bk/bv : (N*H, 1, hd)    per-head in-projection bias slabs
    wout_ref : (N*H, hd, E)    per-head out-projection weight slabs
    bout_ref : (1, E)          out-projection bias
    wt_ref   : (E, E)          threat_weight.T
    o_ref    : (N*L, E)        stressed output
    """
    f32 = jnp.float32
    scale = 1.0 / math.sqrt(head_dim)

    # ---- head-batched in-projection (MXU); batch axis = N*H, no lane slicing ----
    xh = xh_ref[...]                                                    # (N*H, L, E)
    q = jnp.einsum("ble,bed->bld", xh, wq_ref[...],
                   preferred_element_type=f32) + bq_ref[...]            # (N*H, L, hd)
    k = jnp.einsum("ble,bed->bld", xh, wk_ref[...],
                   preferred_element_type=f32) + bk_ref[...]
    v = jnp.einsum("ble,bed->bld", xh, wv_ref[...],
                   preferred_element_type=f32) + bv_ref[...]

    # ---- scaled dot-product attention, batched over (batch * heads) ----
    s = jnp.einsum("bqd,bkd->bqk", q, k, preferred_element_type=f32) * scale
    s = s - jnp.max(s, axis=-1, keepdims=True)
    p = jnp.exp(s)
    p = p * pl.reciprocal(jnp.sum(p, axis=-1, keepdims=True), approx=False)
    ctx = jnp.einsum("bqk,bkd->bqd", p, v, preferred_element_type=f32)  # (N*H, L, hd)

    # ---- out-projection: per-head contributions summed over heads ----
    attn_ph = jnp.einsum("bld,bde->ble", ctx, wout_ref[...],
                         preferred_element_type=f32)                    # (N*H, L, E)
    attn = jnp.sum(attn_ph.reshape(batch, num_heads, seq_len, attn_ph.shape[-1]),
                   axis=1)                                              # (N, L, E)
    attn = attn.reshape(batch * seq_len, attn.shape[-1]) + bout_ref[...]  # (N*L, E)

    # ---- threat projection + stress() epilogue ----
    threat = jnp.dot(x_ref[...], wt_ref[...], preferred_element_type=f32)  # (N*L, E)
    # stress(): both torch.where branches collapse to attn + |threat - attn| (bit-exact).
    o_ref[...] = (attn + jnp.abs(threat - attn)).astype(o_ref.dtype)


def self_attention_forward(query, key, value, tot_result, params, *, num_heads):
    """query/key/value: (L, N, E) with query is key is value (self-attention)."""
    del key, value, tot_result  # self-attention; tot_result only matters if TRAIN
    L, N, E = query.shape
    H = num_heads
    hd = E // H
    assert hd * H == E

    # ---- wrapper-side layout prep (plain JAX glue, one-off, outside the kernel) ----
    x = jnp.transpose(query, (1, 0, 2))                     # (N, L, E)
    x_flat = x.reshape(N * L, E)                            # (N*L, E)
    xh = jnp.broadcast_to(x[:, None], (N, H, L, E)).reshape(N * H, L, E)

    wq, wk, wv = jnp.split(params["in_proj_weight"], 3, axis=0)   # each (E, E)
    bq, bk, bv = jnp.split(params["in_proj_bias"], 3, axis=0)     # each (E,)

    def head_stack_w(w):
        # w: (E_out, E_in); per-head slice transposed for (x @ W_h): (N*H, E_in, hd)
        wt = jnp.transpose(w.reshape(H, hd, E), (0, 2, 1))        # (H, E_in, hd)
        return jnp.broadcast_to(wt[None], (N, H, E, hd)).reshape(N * H, E, hd)

    def head_stack_b(b):
        bh = b.reshape(H, 1, hd)                                  # (H, 1, hd)
        return jnp.broadcast_to(bh[None], (N, H, 1, hd)).reshape(N * H, 1, hd)

    wq_h, wk_h, wv_h = head_stack_w(wq), head_stack_w(wk), head_stack_w(wv)
    bq_h, bk_h, bv_h = head_stack_b(bq), head_stack_b(bk), head_stack_b(bv)

    # out_proj: attn = ctx @ Wout.T = sum_h ctx_h @ (Wout.T)[h*hd:(h+1)*hd, :]
    wout_t = params["out_proj_weight"].T                          # (E_in, E_out)
    wout_h = jnp.broadcast_to(wout_t.reshape(H, hd, E)[None],
                              (N, H, hd, E)).reshape(N * H, hd, E)
    bout = params["out_proj_bias"].reshape(1, E)
    wt_t = params["threat_weight"].T                              # (E, E)

    kernel = functools.partial(_stress_attention_kernel,
                               batch=N, seq_len=L, num_heads=H, head_dim=hd)

    vmem = pl.BlockSpec(memory_space=pltpu.MemorySpace.VMEM)
    out_flat = pl.pallas_call(                                    # single invocation, no grid
        kernel,
        in_specs=[vmem] * 11,
        out_specs=vmem,
        out_shape=jax.ShapeDtypeStruct((N * L, E), query.dtype),
    )(x_flat, xh, wq_h, wk_h, wv_h, bq_h, bk_h, bv_h, wout_h, bout, wt_t)

    return jnp.transpose(out_flat.reshape(N, L, E), (1, 0, 2))    # back to (L, N, E)


def _reference_forward(query, params, num_heads):
    """Pure-JAX reference mirroring PyTorch multi_head_attention + stress()."""
    L, N, E = query.shape
    hd = E // num_heads
    qkv = query @ params["in_proj_weight"].T + params["in_proj_bias"]  # (L, N, 3E)
    q, k, v = jnp.split(qkv, 3, axis=-1)

    def to_heads(t):
        return jnp.transpose(t.reshape(L, N * num_heads, hd), (1, 0, 2))

    qh, kh, vh = to_heads(q), to_heads(k), to_heads(v)
    s = jnp.einsum("bld,bmd->blm", qh, kh) / math.sqrt(hd)
    p = jax.nn.softmax(s, axis=-1)
    ctx = jnp.einsum("blm,bmd->bld", p, vh)
    ctx = jnp.transpose(ctx, (1, 0, 2)).reshape(L, N, E)
    attn_out = ctx @ params["out_proj_weight"].T + params["out_proj_bias"]
    threat = query @ params["threat_weight"].T
    diff = threat - attn_out
    return jnp.where(diff < 0, attn_out - diff, attn_out + jnp.abs(diff))


def _xavier_uniform(key, shape):
    fan_out, fan_in = shape
    bound = math.sqrt(6.0 / (fan_in + fan_out))
    return jax.random.uniform(key, shape, jnp.float32, -bound, bound)


if __name__ == "__main__":
    # Small shapes consistent with the module: embed_dim=32, num_heads=4,
    # seq L=8, batch N=2, batch_first=False -> query is (L, N, E).
    E, H, L, N = 32, 4, 8, 2

    root = jax.random.PRNGKey(0)
    k_q, k_w1, k_w2, k_wt = jax.random.split(root, 4)

    # Deterministic synthetic parameters (shapes from __init__):
    #   in_proj_weight (3E, E) xavier-uniform, in_proj_bias (3E,) zeros,
    #   out_proj.weight (E, E), out_proj.bias (E,) zeros,
    #   threat_weight (E, E) (checkpoint-loaded in the original; synthetic here).
    params = {
        "in_proj_weight": _xavier_uniform(k_w1, (3 * E, E)),
        "in_proj_bias": jnp.zeros((3 * E,), jnp.float32),
        "out_proj_weight": _xavier_uniform(k_w2, (E, E)),
        "out_proj_bias": jnp.zeros((E,), jnp.float32),
        "threat_weight": 0.05 * jax.random.normal(k_wt, (E, E), jnp.float32),
    }

    query = jax.random.normal(k_q, (L, N, E), jnp.float32)
    tot_result = jnp.ones((L, N, E), jnp.float32)  # unused when TRAIN=False

    out = self_attention_forward(query, query, query, tot_result,
                                 params, num_heads=H)
    out = jax.block_until_ready(out)

    ref = _reference_forward(query, params, H)
    np.testing.assert_allclose(np.asarray(out), np.asarray(ref),
                               rtol=1e-5, atol=1e-5)

    # TODO(synk): self.norm (LayerNorm) is defined but never applied in the original
    # forward; TRAIN-mode threat_weight updates / torch.save checkpointing are
    # host-side state and are intentionally not reproduced.
    print("KERNEL_OK")
</pallas_src>

<mosaic_0001>
module attributes {stable_mosaic.version = 11 : i64} {
  func.func @_stress_attention_kernel(%arg0: memref<16x32xf32, #tpu.memory_space<vmem>>, %arg1: memref<8x8x32xf32, #tpu.memory_space<vmem>>, %arg2: memref<8x32x8xf32, #tpu.memory_space<vmem>>, %arg3: memref<8x32x8xf32, #tpu.memory_space<vmem>>, %arg4: memref<8x32x8xf32, #tpu.memory_space<vmem>>, %arg5: memref<8x1x8xf32, #tpu.memory_space<vmem>>, %arg6: memref<8x1x8xf32, #tpu.memory_space<vmem>>, %arg7: memref<8x1x8xf32, #tpu.memory_space<vmem>>, %arg8: memref<8x8x32xf32, #tpu.memory_space<vmem>>, %arg9: memref<1x32xf32, #tpu.memory_space<vmem>>, %arg10: memref<32x32xf32, #tpu.memory_space<vmem>>, %arg11: memref<16x32xf32, #tpu.memory_space<vmem>>) attributes {dimension_semantics = [], scalar_prefetch = 0 : i64, scratch_operands = 0 : i64, tpu.core_type = #tpu.core_type<tc>} {
    %c0 = arith.constant 0 : index
    %c0_0 = arith.constant 0 : index
    %c0_1 = arith.constant 0 : index
    %0 = vector.load %arg1[%c0, %c0_0, %c0_1] : memref<8x8x32xf32, #tpu.memory_space<vmem>>, vector<8x8x32xf32>
    %c0_2 = arith.constant 0 : index
    %c0_3 = arith.constant 0 : index
    %c0_4 = arith.constant 0 : index
    %1 = vector.load %arg2[%c0_2, %c0_3, %c0_4] : memref<8x32x8xf32, #tpu.memory_space<vmem>>, vector<8x32x8xf32>
    "tpu.trace_start"() <{level = 10 : i32, message = "ble,bed->bld"}> : () -> ()
    %cst = arith.constant dense<0.000000e+00> : vector<8x8x8xf32>
    %2 = tpu.matmul %0, %1, %cst {dimension_numbers = #tpu.dot_dimension_numbers<[2], [1], [1], [2], [0, 0, 0, 1, 1, 2], [0], [0]>} : vector<8x8x32xf32>, vector<8x32x8xf32>, vector<8x8x8xf32> -> vector<8x8x8xf32>
    "tpu.trace_stop"() : () -> ()
    %c0_5 = arith.constant 0 : index
    %c0_6 = arith.constant 0 : index
    %c0_7 = arith.constant 0 : index
    %3 = vector.load %arg5[%c0_5, %c0_6, %c0_7] : memref<8x1x8xf32, #tpu.memory_space<vmem>>, vector<8x1x8xf32>
    %4 = vector.broadcast %3 : vector<8x1x8xf32> to vector<8x8x8xf32>
    %5 = arith.addf %2, %4 : vector<8x8x8xf32>
    %c0_8 = arith.constant 0 : index
    %c0_9 = arith.constant 0 : index
    %c0_10 = arith.constant 0 : index
    %6 = vector.load %arg3[%c0_8, %c0_9, %c0_10] : memref<8x32x8xf32, #tpu.memory_space<vmem>>, vector<8x32x8xf32>
    "tpu.trace_start"() <{level = 10 : i32, message = "ble,bed->bld"}> : () -> ()
    %cst_11 = arith.constant dense<0.000000e+00> : vector<8x8x8xf32>
    %7 = tpu.matmul %0, %6, %cst_11 {dimension_numbers = #tpu.dot_dimension_numbers<[2], [1], [1], [2], [0, 0, 0, 1, 1, 2], [0], [0]>} : vector<8x8x32xf32>, vector<8x32x8xf32>, vector<8x8x8xf32> -> vector<8x8x8xf32>
    "tpu.trace_stop"() : () -> ()
    %c0_12 = arith.constant 0 : index
    %c0_13 = arith.constant 0 : index
    %c0_14 = arith.constant 0 : index
    %8 = vector.load %arg6[%c0_12, %c0_13, %c0_14] : memref<8x1x8xf32, #tpu.memory_space<vmem>>, vector<8x1x8xf32>
    %9 = vector.broadcast %8 : vector<8x1x8xf32> to vector<8x8x8xf32>
    %10 = arith.addf %7, %9 : vector<8x8x8xf32>
    %c0_15 = arith.constant 0 : index
    %c0_16 = arith.constant 0 : index
    %c0_17 = arith.constant 0 : index
    %11 = vector.load %arg4[%c0_15, %c0_16, %c0_17] : memref<8x32x8xf32, #tpu.memory_space<vmem>>, vector<8x32x8xf32>
    "tpu.trace_start"() <{level = 10 : i32, message = "ble,bed->bld"}> : () -> ()
    %cst_18 = arith.constant dense<0.000000e+00> : vector<8x8x8xf32>
    %12 = tpu.matmul %0, %11, %cst_18 {dimension_numbers = #tpu.dot_dimension_numbers<[2], [1], [1], [2], [0, 0, 0, 1, 1, 2], [0], [0]>} : vector<8x8x32xf32>, vector<8x32x8xf32>, vector<8x8x8xf32> -> vector<8x8x8xf32>
    "tpu.trace_stop"() : () -> ()
    %c0_19 = arith.constant 0 : index
    %c0_20 = arith.constant 0 : index
    %c0_21 = arith.constant 0 : index
    %13 = vector.load %arg7[%c0_19, %c0_20, %c0_21] : memref<8x1x8xf32, #tpu.memory_space<vmem>>, vector<8x1x8xf32>
    %14 = vector.broadcast %13 : vector<8x1x8xf32> to vector<8x8x8xf32>
    %15 = arith.addf %12, %14 : vector<8x8x8xf32>
    "tpu.trace_start"() <{level = 10 : i32, message = "bqd,bkd->bqk"}> : () -> ()
    %cst_22 = arith.constant dense<0.000000e+00> : vector<8x8x8xf32>
    %16 = tpu.matmul %5, %10, %cst_22 {dimension_numbers = #tpu.dot_dimension_numbers<[2], [2], [1], [1], [0, 0, 0, 1, 1, 1], [0], [0]>} : vector<8x8x8xf32>, vector<8x8x8xf32>, vector<8x8x8xf32> -> vector<8x8x8xf32>
    "tpu.trace_stop"() : () -> ()
    %cst_23 = arith.constant 0.353553385 : f32
    %17 = vector.broadcast %cst_23 : f32 to vector<8x8x8xf32>
    %18 = arith.mulf %16, %17 : vector<8x8x8xf32>
    %cst_24 = arith.constant dense<0xFF800000> : vector<8x8xf32>
    %19 = vector.multi_reduction <maximumf>, %18, %cst_24 [2] : vector<8x8x8xf32> to vector<8x8xf32>
    %20 = vector.shape_cast %19 : vector<8x8xf32> to vector<8x8x1xf32>
    %21 = vector.broadcast %20 : vector<8x8x1xf32> to vector<8x8x8xf32>
    %22 = arith.subf %18, %21 : vector<8x8x8xf32>
    %23 = math.exp %22 : vector<8x8x8xf32>
    %cst_25 = arith.constant dense<0.000000e+00> : vector<8x8xf32>
    %24 = vector.multi_reduction <add>, %23, %cst_25 [2] : vector<8x8x8xf32> to vector<8x8xf32>
    %25 = vector.shape_cast %24 : vector<8x8xf32> to vector<8x8x1xf32>
    %26 = tpu.reciprocal %25 : vector<8x8x1xf32> -> vector<8x8x1xf32>
    %27 = vector.broadcast %26 : vector<8x8x1xf32> to vector<8x8x8xf32>
    %28 = arith.mulf %23, %27 : vector<8x8x8xf32>
    "tpu.trace_start"() <{level = 10 : i32, message = "bqk,bkd->bqd"}> : () -> ()
    %cst_26 = arith.constant dense<0.000000e+00> : vector<8x8x8xf32>
    %29 = tpu.matmul %28, %15, %cst_26 {dimension_numbers = #tpu.dot_dimension_numbers<[2], [1], [1], [2], [0, 0, 0, 1, 1, 2], [0], [0]>} : vector<8x8x8xf32>, vector<8x8x8xf32>, vector<8x8x8xf32> -> vector<8x8x8xf32>
    "tpu.trace_stop"() : () -> ()
    %c0_27 = arith.constant 0 : index
    %c0_28 = arith.constant 0 : index
    %c0_29 = arith.constant 0 : index
    %30 = vector.load %arg8[%c0_27, %c0_28, %c0_29] : memref<8x8x32xf32, #tpu.memory_space<vmem>>, vector<8x8x32xf32>
    "tpu.trace_start"() <{level = 10 : i32, message = "bld,bde->ble"}> : () -> ()
    %cst_30 = arith.constant dense<0.000000e+00> : vector<8x8x32xf32>
    %31 = tpu.matmul %29, %30, %cst_30 {dimension_numbers = #tpu.dot_dimension_numbers<[2], [1], [1], [2], [0, 0, 0, 1, 1, 2], [0], [0]>} : vector<8x8x8xf32>, vector<8x8x32xf32>, vector<8x8x32xf32> -> vector<8x8x32xf32>
    "tpu.trace_stop"() : () -> ()
    %32 = vector.shape_cast %31 : vector<8x8x32xf32> to vector<2x4x8x32xf32>
    %cst_31 = arith.constant dense<0.000000e+00> : vector<2x8x32xf32>
    %33 = vector.multi_reduction <add>, %32, %cst_31 [1] : vector<2x4x8x32xf32> to vector<2x8x32xf32>
    %34 = vector.shape_cast %33 : vector<2x8x32xf32> to vector<16x32xf32>
    %c0_32 = arith.constant 0 : index
    %c0_33 = arith.constant 0 : index
    %35 = vector.load %arg9[%c0_32, %c0_33] : memref<1x32xf32, #tpu.memory_space<vmem>>, vector<1x32xf32>
    %36 = vector.broadcast %35 : vector<1x32xf32> to vector<16x32xf32>
    %37 = arith.addf %34, %36 : vector<16x32xf32>
    %c0_34 = arith.constant 0 : index
    %c0_35 = arith.constant 0 : index
    %38 = vector.load %arg0[%c0_34, %c0_35] : memref<16x32xf32, #tpu.memory_space<vmem>>, vector<16x32xf32>
    %c0_36 = arith.constant 0 : index
    %c0_37 = arith.constant 0 : index
    %39 = vector.load %arg10[%c0_36, %c0_37] : memref<32x32xf32, #tpu.memory_space<vmem>>, vector<32x32xf32>
    %cst_38 = arith.constant dense<0.000000e+00> : vector<16x32xf32>
    %40 = tpu.matmul %38, %39, %cst_38 {dimension_numbers = #tpu.dot_dimension_numbers<[1], [0], [0], [1], [0, 0, 1, 1], [], []>} : vector<16x32xf32>, vector<32x32xf32>, vector<16x32xf32> -> vector<16x32xf32>
    %41 = arith.subf %40, %37 : vector<16x32xf32>
    %42 = math.absf %41 : vector<16x32xf32>
    %43 = arith.addf %37, %42 : vector<16x32xf32>
    %c0_39 = arith.constant 0 : index
    %c0_40 = arith.constant 0 : index
    %44 = vector.load %arg11[%c0_39, %c0_40] : memref<16x32xf32, #tpu.memory_space<vmem>>, vector<16x32xf32>
    tpu.vector_store %arg11[%c0_39, %c0_40], %43 {strides = array<i32>} : memref<16x32xf32, #tpu.memory_space<vmem>>, vector<16x32xf32>,
    return
  }
}

</mosaic_0001>

<bundles_post_ra>
// kernel: tpu_custom_call.1
= control target key start
LH: loop header
LB: loop body
LE: loop exit
PB: predicated region body
PF: predicated region fallthrough
CT: control target
= control target key end

     0   :  { %v4897_v3 = vmov 0.0|0.0   ;;  %vm4898_vm0 = vmmov 0   ;;  %v4899_v11 = vmov 0.0   ;;  %vm135_vm1 = vcmask 261120   ;;  %s5736_s0 = inlined_call_operand.vmem [shape: f32[16,32], index: 0, kind: input, shape index: {}]   ;;  %s5737_s1 = inlined_call_operand.vmem [shape: f32[8,8,32], index: 1, kind: input, shape index: {}]   ;;  %s5738_s2 = inlined_call_operand.vmem [shape: f32[8,32,8], index: 2, kind: input, shape index: {}]   ;;  %s5739_s3 = inlined_call_operand.vmem [shape: f32[8,32,8], index: 3, kind: input, shape index: {}]   ;;  %s5740_s4 = inlined_call_operand.vmem [shape: f32[8,32,8], index: 4, kind: input, shape index: {}]   ;;  %s5741_s5 = inlined_call_operand.vmem [shape: f32[8,1,8], index: 5, kind: input, shape index: {}]   ;;  %s5742_s6 = inlined_call_operand.vmem [shape: f32[8,1,8], index: 6, kind: input, shape index: {}]   ;;  %s5743_s7 = inlined_call_operand.vmem [shape: f32[8,1,8], index: 7, kind: input, shape index: {}]   ;;  %s5744_s8 = inlined_call_operand.vmem [shape: f32[8,8,32], index: 8, kind: input, shape index: {}]   ;;  %s5745_s9 = inlined_call_operand.vmem [shape: f32[1,32], index: 9, kind: input, shape index: {}]   ;;  %s5746_s10 = inlined_call_operand.vmem [shape: f32[32,32], index: 10, kind: input, shape index: {}]   ;;  %s5747_s11 = inlined_call_operand.hbm [shape: f32[16,32], index: 11, kind: output, shape index: {}]  }
   0x1   :  { %v47_v0 = vld [vmem:[%s5738_s2] sm:$0xff]  ;;  %v48_v1 = vld [vmem:[%s5738_s2 + $0x8] sm:$0xff]  ;;  %4683 = vmatprep.subr.bf16.mxu0 %v4897_v3  ;;  %4689 = vmatprep.subr.bf16.mxu1 %v4897_v3  ;;  %v49_v6 = vld [vmem:[%s5738_s2 + $0x10] sm:$0xff] }
   0x2   :  { %v51_v2 = vld [vmem:[%s5738_s2 + $0x20] sm:$0xff]  ;;  %v4684_v4 = vpack.c.bf16 %v48_v1, %v47_v0  ;;  %v52_v5 = vld [vmem:[%s5738_s2 + $0x28] sm:$0xff]  ;;  %v50_v7 = vld [vmem:[%s5738_s2 + $0x18] sm:$0xff]  ;;  %4296 = vmatprep.mubr.msk.f32.mxu0 %vm4898_vm0, %v4899_v11  ;;  %4307 = vmatprep.mubr.msk.f32.mxu1 %vm4898_vm0, %v4899_v11 }
   0x3   :  { %v4690_v8 = vpack.c.bf16 %v52_v5, %v51_v2  ;;  %v53_v9 = vld [vmem:[%s5738_s2 + $0x30] sm:$0xff]  ;;  %v54_v10 = vld [vmem:[%s5738_s2 + $0x38] sm:$0xff]  ;;  %v4687_v12 = vpack.c.bf16 %v50_v7, %v49_v6  ;;  %v55_v14 = vld [vmem:[%s5738_s2 + $0x40] sm:$0xff] }
   0x4   :  { %4685 = vmatpush3.bf16.msra.mxu0 %v4684_v4  ;;  %v4693_v13 = vpack.c.bf16 %v54_v10, %v53_v9  ;;  %v56_v15 = vld [vmem:[%s5738_s2 + $0x48] sm:$0xff]  ;;  %v59_v16 = vld [vmem:[%s5738_s2 + $0x60] sm:$0xff]  ;;  %v57_v22 = vld [vmem:[%s5738_s2 + $0x50] sm:$0xff] }
   0x5   :  { %4691 = vmatpush3.bf16.msra.mxu1 %v4690_v8  ;;  %4686 = vmatprep.subr.bf16.mxu0 %v4897_v3  ;;  %v60_v17 = vld [vmem:[%s5738_s2 + $0x68] sm:$0xff]  ;;  %v5010_v18 = vld [vmem:[%s5737_s1] sm:$0xff]  ;;  %v4696_v19 = vpack.c.bf16 %v56_v15, %v55_v14  ;;  %v58_v23 = vld [vmem:[%s5738_s2 + $0x58] sm:$0xff] }
   0x6   :  { %4692 = vmatprep.subr.bf16.mxu1 %v4897_v3  ;;  %v5016_v20 = vld [vmem:[%s5737_s1 + $0x8] sm:$0xff]  ;;  %v4702_v21 = vpack.c.bf16 %v60_v17, %v59_v16  ;;  %v61_v24 = vld [vmem:[%s5738_s2 + $0x70] sm:$0xff]  ;;  %v62_v25 = vld [vmem:[%s5738_s2 + $0x78] sm:$0xff]  ;;  %v4699_v26 = vpack.c.bf16 %v58_v23, %v57_v22 }
   0x7   :  { %v4705_v27 = vpack.c.bf16 %v62_v25, %v61_v24  ;;  %v63_v28 = vld [vmem:[%s5738_s2 + $0x80] sm:$0xff]  ;;  %v64_v29 = vld [vmem:[%s5738_s2 + $0x88] sm:$0xff]  ;;  %v5056_v32 = vld [vmem:[%s5737_s1 + $0x10] sm:$0xff] }
   0x8   :  { %4688 = vmatpush3.bf16.msra.mxu0 %v4687_v12  ;;  %v67_v30 = vld [vmem:[%s5738_s2 + $0xa0] sm:$0xff]  ;;  %v68_v31 = vld [vmem:[%s5738_s2 + $0xa8] sm:$0xff]  ;;  %v4708_v33 = vpack.c.bf16 %v64_v29, %v63_v28  ;;  %v5062_v34 = vld [vmem:[%s5737_s1 + $0x18] sm:$0xff] }
   0x9   :  { %4694 = vmatpush3.bf16.msra.mxu1 %v4693_v13  ;;  %4695 = vmatprep.subr.bf16.mxu0 %v4897_v3  ;;  %v4714_v35 = vpack.c.bf16 %v68_v31, %v67_v30  ;;  %v65_v36 = vld [vmem:[%s5738_s2 + $0x90] sm:$0xff]  ;;  %v66_v37 = vld [vmem:[%s5738_s2 + $0x98] sm:$0xff]  ;;  %v71_v42 = vld [vmem:[%s5738_s2 + $0xc0] sm:$0xff] }
   0xa   :  { %4701 = vmatprep.subr.bf16.mxu1 %v4897_v3  ;;  %v69_v38 = vld [vmem:[%s5738_s2 + $0xb0] sm:$0xff]  ;;  %v70_v39 = vld [vmem:[%s5738_s2 + $0xb8] sm:$0xff]  ;;  %v4711_v40 = vpack.c.bf16 %v66_v37, %v65_v36  ;;  %v72_v43 = vld [vmem:[%s5738_s2 + $0xc8] sm:$0xff] }
   0xb   :  { %4297 = vmatmul.mubr.msk.f32.vlgmr.msra.gmra.mrb[0].mxu0 %vm135_vm1, %v5010_v18  ;;  %v4717_v41 = vpack.c.bf16 %v70_v39, %v69_v38  ;;  %v75_v44 = vld [vmem:[%s5738_s2 + $0xe0] sm:$0xff]  ;;  %v76_v45 = vld [vmem:[%s5738_s2 + $0xe8] sm:$0xff]  ;;  %v4720_v47 = vpack.c.bf16 %v72_v43, %v71_v42  ;;  %v73_v50 = vld [vmem:[%s5738_s2 + $0xd0] sm:$0xff] }
   0xc   :  { %4308 = vmatmul.mubr.msk.f32.vlgmr.msra.gmra.mrb[0].mxu1 %vm135_vm1, %v5016_v20  ;;  %4697 = vmatpush3.bf16.msra.mxu0 %v4696_v19  ;;  %v5102_v46 = vld [vmem:[%s5737_s1 + $0x20] sm:$0xff]  ;;  %v5108_v48 = vld [vmem:[%s5737_s1 + $0x28] sm:$0xff]  ;;  %v4726_v49 = vpack.c.bf16 %v76_v45, %v75_v44  ;;  %v74_v51 = vld [vmem:[%s5738_s2 + $0xd8] sm:$0xff] }
   0xd   :  { %4703 = vmatpush3.bf16.msra.mxu1 %v4702_v21  ;;  %4698 = vmatprep.subr.bf16.mxu0 %v4897_v3  ;;  %v77_v52 = vld [vmem:[%s5738_s2 + $0xf0] sm:$0xff]  ;;  %v78_v53 = vld [vmem:[%s5738_s2 + $0xf8] sm:$0xff] }
   0xe   :  { %4704 = vmatprep.subr.bf16.mxu1 %v4897_v3  ;;  %4318 = vmatprep.mubr.msk.f32.mxu0 %vm4898_vm0, %v4899_v11 }
   0xf   :  { %4329 = vmatprep.mubr.msk.f32.mxu1 %vm4898_vm0, %v4899_v11 }
  0x10   :  { %4700 = vmatpush3.bf16.msra.mxu0 %v4699_v26 }
  0x11   :  { %4706 = vmatpush3.bf16.msra.mxu1 %v4705_v27  ;;  %4707 = vmatprep.subr.bf16.mxu0 %v4897_v3 }
  0x12   :  { %4713 = vmatprep.subr.bf16.mxu1 %v4897_v3 }
  0x13   :  { %4319 = vmatmul.mubr.msk.f32.vlgmr.msra.gmra.mrb[2].mxu0 %vm135_vm1, %v5056_v32 }
  0x14   :  { %4330 = vmatmul.mubr.msk.f32.vlgmr.msra.gmra.mrb[2].mxu1 %vm135_vm1, %v5062_v34  ;;  %4709 = vmatpush3.bf16.msra.mxu0 %v4708_v33 }
  0x15   :  { %4715 = vmatpush3.bf16.msra.mxu1 %v4714_v35  ;;  %4710 = vmatprep.subr.bf16.mxu0 %v4897_v3 }
  0x16   :  { %4716 = vmatprep.subr.bf16.mxu1 %v4897_v3  ;;  %4340 = vmatprep.mubr.msk.f32.mxu0 %vm4898_vm0, %v4899_v11 }
  0x17   :  { %4351 = vmatprep.mubr.msk.f32.mxu1 %vm4898_vm0, %v4899_v11 }
  0x18   :  { %4712 = vmatpush3.bf16.msra.mxu0 %v4711_v40 }
  0x19   :  { %4718 = vmatpush3.bf16.msra.mxu1 %v4717_v41  ;;  %4719 = vmatprep.subr.bf16.mxu0 %v4897_v3 }
  0x1a   :  { %4725 = vmatprep.subr.bf16.mxu1 %v4897_v3 }
  0x1b   :  { %16 = vsyncpa [#allocation3], 0  ;;  %4341 = vmatmul.mubr.msk.f32.vlgmr.msra.gmra.mrb[4].mxu0 %vm135_vm1, %v5102_v46  ;;  %v4723_v54 = vpack.c.bf16 %v74_v51, %v73_v50  ;;  %v4729_v55 = vpack.c.bf16 %v78_v53, %v77_v52  ;;  %v720_v56 = vld [vmem:[%s5739_s3] sm:$0xff]  ;;  %v721_v57 = vld [vmem:[%s5739_s3 + $0x8] sm:$0xff]  ;;  %vm2016_vm2 = vcmask 64512  }
  0x1c   :  { %4352 = vmatmul.mubr.msk.f32.vlgmr.msra.gmra.mrb[4].mxu1 %vm135_vm1, %v5108_v48  ;;  %4721 = vmatpush3.bf16.msra.mxu0 %v4720_v47  ;;  %v724_v58 = vld [vmem:[%s5739_s3 + $0x20] sm:$0xff]  ;;  %v725_v59 = vld [vmem:[%s5739_s3 + $0x28] sm:$0xff]  ;;  %v5148_v60 = vld [vmem:[%s5737_s1 + $0x30] sm:$0xff]  ;;  %v4732_v61 = vpack.c.bf16 %v721_v57, %v720_v56 }
  0x1d   :  { %4727 = vmatpush3.bf16.msra.mxu1 %v4726_v49  ;;  %4722 = vmatprep.subr.bf16.mxu0 %v4897_v3  ;;  %v5154_v62 = vld [vmem:[%s5737_s1 + $0x38] sm:$0xff]  ;;  %v4738_v63 = vpack.c.bf16 %v725_v59, %v724_v58  ;;  %v722_v0 = vld [vmem:[%s5739_s3 + $0x10] sm:$0xff]  ;;  %v728_v7 = vld [vmem:[%s5739_s3 + $0x40] sm:$0xff] }
  0x1e   :  { %4728 = vmatprep.subr.bf16.mxu1 %v4897_v3  ;;  %4362 = vmatprep.mubr.msk.f32.mxu0 %vm4898_vm0, %v4899_v11  ;;  %v723_v1 = vld [vmem:[%s5739_s3 + $0x18] sm:$0xff]  ;;  %v726_v2 = vld [vmem:[%s5739_s3 + $0x30] sm:$0xff]  ;;  %v729_v8 = vld [vmem:[%s5739_s3 + $0x48] sm:$0xff] }
  0x1f   :  { %4373 = vmatprep.mubr.msk.f32.mxu1 %vm4898_vm0, %v4899_v11  ;;  %v727_v4 = vld [vmem:[%s5739_s3 + $0x38] sm:$0xff]  ;;  %v4735_v5 = vpack.c.bf16 %v723_v1, %v722_v0  ;;  %v732_v9 = vld [vmem:[%s5739_s3 + $0x60] sm:$0xff]  ;;  %v733_v10 = vld [vmem:[%s5739_s3 + $0x68] sm:$0xff]  ;;  %v4744_v12 = vpack.c.bf16 %v729_v8, %v728_v7 }
  0x20   :  { %4724 = vmatpush3.bf16.msra.mxu0 %v4723_v54  ;;  %v4741_v6 = vpack.c.bf16 %v727_v4, %v726_v2  ;;  %v4750_v13 = vpack.c.bf16 %v733_v10, %v732_v9  ;;  %v730_v14 = vld [vmem:[%s5739_s3 + $0x50] sm:$0xff]  ;;  %v731_v15 = vld [vmem:[%s5739_s3 + $0x58] sm:$0xff]  ;;  %v736_v22 = vld [vmem:[%s5739_s3 + $0x80] sm:$0xff] }
  0x21   :  { %4730 = vmatpush3.bf16.msra.mxu1 %v4729_v55  ;;  %4731 = vmatprep.subr.bf16.mxu0 %v4897_v3  ;;  %v734_v16 = vld [vmem:[%s5739_s3 + $0x70] sm:$0xff]  ;;  %v735_v17 = vld [vmem:[%s5739_s3 + $0x78] sm:$0xff]  ;;  %v4747_v19 = vpack.c.bf16 %v731_v15, %v730_v14  ;;  %v737_v23 = vld [vmem:[%s5739_s3 + $0x88] sm:$0xff] }
  0x22   :  { %4737 = vmatprep.subr.bf16.mxu1 %v4897_v3  ;;  %v4753_v21 = vpack.c.bf16 %v735_v17, %v734_v16  ;;  %v740_v24 = vld [vmem:[%s5739_s3 + $0xa0] sm:$0xff]  ;;  %v741_v25 = vld [vmem:[%s5739_s3 + $0xa8] sm:$0xff]  ;;  %v4756_v26 = vpack.c.bf16 %v737_v23, %v736_v22  ;;  %v738_v28 = vld [vmem:[%s5739_s3 + $0x90] sm:$0xff] }
  0x23   :  { %4363 = vmatmul.mubr.msk.f32.vlgmr.msra.gmra.mrb[6].mxu0 %vm135_vm1, %v5148_v60  ;;  %v4762_v27 = vpack.c.bf16 %v741_v25, %v740_v24  ;;  %v739_v29 = vld [vmem:[%s5739_s3 + $0x98] sm:$0xff]  ;;  %v742_v30 = vld [vmem:[%s5739_s3 + $0xb0] sm:$0xff]  ;;  %v744_v36 = vld [vmem:[%s5739_s3 + $0xc0] sm:$0xff] }
  0x24   :  { %4374 = vmatmul.mubr.msk.f32.vlgmr.msra.gmra.mrb[6].mxu1 %vm135_vm1, %v5154_v62  ;;  %4733 = vmatpush3.bf16.msra.mxu0 %v4732_v61  ;;  %v743_v31 = vld [vmem:[%s5739_s3 + $0xb8] sm:$0xff]  ;;  %v4759_v33 = vpack.c.bf16 %v739_v29, %v738_v28  ;;  %v745_v37 = vld [vmem:[%s5739_s3 + $0xc8] sm:$0xff]  ;;  %v748_v38 = vld [vmem:[%s5739_s3 + $0xe0] sm:$0xff] }
  0x25   :  { %4739 = vmatpush3.bf16.msra.mxu1 %v4738_v63  ;;  %4734 = vmatprep.subr.bf16.mxu0 %v4897_v3  ;;  %v4765_v35 = vpack.c.bf16 %v743_v31, %v742_v30  ;;  %v749_v39 = vld [vmem:[%s5739_s3 + $0xe8] sm:$0xff]  ;;  %v4768_v40 = vpack.c.bf16 %v745_v37, %v744_v36  ;;  %v746_v42 = vld [vmem:[%s5739_s3 + $0xd0] sm:$0xff]  ;;  %v747_v43 = vld [vmem:[%s5739_s3 + $0xd8] sm:$0xff] }
  0x26   :  { %4740 = vmatprep.subr.bf16.mxu1 %v4897_v3  ;;  %4384 = vmatprep.mubr.msk.f32.mxu0 %vm4898_vm0, %v4899_v11  ;;  %v4774_v41 = vpack.c.bf16 %v749_v39, %v748_v38  ;;  %v750_v44 = vld [vmem:[%s5739_s3 + $0xf0] sm:$0xff]  ;;  %v751_v45 = vld [vmem:[%s5739_s3 + $0xf8] sm:$0xff]  ;;  %v4771_v47 = vpack.c.bf16 %v747_v43, %v746_v42  ;;  %v1372_v50 = vld [vmem:[%s5740_s4 + $0x20] sm:$0xff] }
  0x27   :  { %4395 = vmatprep.mubr.msk.f32.mxu1 %vm4898_vm0, %v4899_v11  ;;  %v4777_v49 = vpack.c.bf16 %v751_v45, %v750_v44  ;;  %v1373_v51 = vld [vmem:[%s5740_s4 + $0x28] sm:$0xff]  ;;  %v1374_v53 = vld [vmem:[%s5740_s4 + $0x30] sm:$0xff]  ;;  %v1375_v54 = vld [vmem:[%s5740_s4 + $0x38] sm:$0xff] }
  0x28   :  { %4736 = vmatpush3.bf16.msra.mxu0 %v4735_v5  ;;  %v4786_v52 = vpack.c.bf16 %v1373_v51, %v1372_v50  ;;  %v4789_v55 = vpack.c.bf16 %v1375_v54, %v1374_v53  ;;  %v1368_v56 = vld [vmem:[%s5740_s4] sm:$0xff]  ;;  %v1369_v57 = vld [vmem:[%s5740_s4 + $0x8] sm:$0xff]  ;;  %v1370_v0 = vld [vmem:[%s5740_s4 + $0x10] sm:$0xff] }
  0x29   :  { %4742 = vmatpush3.bf16.msra.mxu1 %v4741_v6  ;;  %4743 = vmatprep.subr.bf16.mxu0 %v4897_v3  ;;  %v1380_v58 = vld [vmem:[%s5740_s4 + $0x60] sm:$0xff]  ;;  %v4780_v59 = vpack.c.bf16 %v1369_v57, %v1368_v56  ;;  %v1381_v61 = vld [vmem:[%s5740_s4 + $0x68] sm:$0xff]  ;;  %v1371_v1 = vld [vmem:[%s5740_s4 + $0x18] sm:$0xff] }
  0x2a   :  { %4749 = vmatprep.subr.bf16.mxu1 %v4897_v3  ;;  %v4798_v63 = vpack.c.bf16 %v1381_v61, %v1380_v58  ;;  %v4783_v2 = vpack.c.bf16 %v1371_v1, %v1370_v0  ;;  %v1383_v4 = vld [vmem:[%s5740_s4 + $0x78] sm:$0xff]  ;;  %v1376_v6 = vld [vmem:[%s5740_s4 + $0x40] sm:$0xff]  ;;  %v1377_v7 = vld [vmem:[%s5740_s4 + $0x48] sm:$0xff] }
  0x2b   :  { %4385 = vmatmul.mubr.msk.f32.vlgmr.msra.gmra.mrb[8].mxu0 %vm135_vm1, %v5010_v18  ;;  %v1388_v8 = vld [vmem:[%s5740_s4 + $0xa0] sm:$0xff]  ;;  %v4792_v9 = vpack.c.bf16 %v1377_v7, %v1376_v6  ;;  %v1389_v10 = vld [vmem:[%s5740_s4 + $0xa8] sm:$0xff]  ;;  %v1379_v14 = vld [vmem:[%s5740_s4 + $0x58] sm:$0xff] }
  0x2c   :  { %4396 = vmatmul.mubr.msk.f32.vlgmr.msra.gmra.mrb[8].mxu1 %vm135_vm1, %v5016_v20  ;;  %4745 = vmatpush3.bf16.msra.mxu0 %v4744_v12  ;;  %v4810_v12 = vpack.c.bf16 %v1389_v10, %v1388_v8  ;;  %v1390_v15 = vld [vmem:[%s5740_s4 + $0xb0] sm:$0xff]  ;;  %v1384_v17 = vld [vmem:[%s5740_s4 + $0x80] sm:$0xff]  ;;  %v1397_v23 = vld [vmem:[%s5740_s4 + $0xe8] sm:$0xff] }
  0x2d   :  { %4751 = vmatpush3.bf16.msra.mxu1 %v4750_v13  ;;  %4746 = vmatprep.subr.bf16.mxu0 %v4897_v3  ;;  %v1378_v13 = vld [vmem:[%s5740_s4 + $0x50] sm:$0xff]  ;;  %v1392_v29 = vld [vmem:[%s5740_s4 + $0xc0] sm:$0xff]  ;;  %v1393_v30 = vld [vmem:[%s5740_s4 + $0xc8] sm:$0xff] }
  0x2e   :  { %4752 = vmatprep.subr.bf16.mxu1 %v4897_v3  ;;  %4406 = vmatprep.mubr.msk.f32.mxu0 %vm4898_vm0, %v4899_v11  ;;  %v1386_v25 = vld [vmem:[%s5740_s4 + $0x90] sm:$0xff]  ;;  %v4816_v31 = vpack.c.bf16 %v1393_v30, %v1392_v29  ;;  %v4047_v51 = vld [vmem:[%s5742_s6] ss:$0 sm:$0xff]  ;;  %v4048_v53 = vld [vmem:[%s5742_s6 + $0x1] ss:$0 sm:$0xff] }
  0x2f   :  { %4417 = vmatprep.mubr.msk.f32.mxu1 %vm4898_vm0, %v4899_v11  ;;  %v4031_v54 = vld [vmem:[%s5741_s5] ss:$0 sm:$0xff]  ;;  %v4049_v0 = vld [vmem:[%s5742_s6 + $0x2] ss:$0 sm:$0xff]  ;;  %v4050_v1 = vld [vmem:[%s5742_s6 + $0x3] ss:$0 sm:$0xff] }
  0x30   :  { %4748 = vmatpush3.bf16.msra.mxu0 %v4747_v19  ;;  %v1385_v19 = vld [vmem:[%s5740_s4 + $0x88] sm:$0xff]  ;;  %v4034_v8 = vld [vmem:[%s5741_s5 + $0x3] ss:$0 sm:$0xff] }
  0x31   :  { %4754 = vmatpush3.bf16.msra.mxu1 %v4753_v21  ;;  %4755 = vmatprep.subr.bf16.mxu0 %v4897_v3  ;;  %v1396_v21 = vld [vmem:[%s5740_s4 + $0xe0] sm:$0xff]  ;;  %v4804_v22 = vpack.c.bf16 %v1385_v19, %v1384_v17 }
  0x32   :  { %4761 = vmatprep.subr.bf16.mxu1 %v4897_v3  ;;  %v4822_v24 = vpack.c.bf16 %v1397_v23, %v1396_v21  ;;  %v4036_v21 = vld [vmem:[%s5741_s5 + $0x5] ss:$0 sm:$0xff] }
  0x33   :  { %4407 = vmatmul.mubr.msk.f32.vlgmr.msra.gmra.mrb[10].mxu0 %vm135_vm1, %v5056_v32 }
  0x34   :  { %4418 = vmatmul.mubr.msk.f32.vlgmr.msra.gmra.mrb[10].mxu1 %vm135_vm1, %v5062_v34  ;;  %4757 = vmatpush3.bf16.msra.mxu0 %v4756_v26  ;;  %v1387_v26 = vld [vmem:[%s5740_s4 + $0x98] sm:$0xff] }
  0x35   :  { %4763 = vmatpush3.bf16.msra.mxu1 %v4762_v27  ;;  %4758 = vmatprep.subr.bf16.mxu0 %v4897_v3  ;;  %v1398_v27 = vld [vmem:[%s5740_s4 + $0xf0] sm:$0xff] }
  0x36   :  { %4764 = vmatprep.subr.bf16.mxu1 %v4897_v3  ;;  %4428 = vmatprep.mubr.msk.f32.mxu0 %vm4898_vm0, %v4899_v11 }
  0x37   :  { %4439 = vmatprep.mubr.msk.f32.mxu1 %vm4898_vm0, %v4899_v11 }
  0x38   :  { %4760 = vmatpush3.bf16.msra.mxu0 %v4759_v33  ;;  %v1394_v33 = vld [vmem:[%s5740_s4 + $0xd0] sm:$0xff] }
  0x39   :  { %4766 = vmatpush3.bf16.msra.mxu1 %v4765_v35  ;;  %4767 = vmatprep.subr.bf16.mxu0 %v4897_v3  ;;  %v1395_v35 = vld [vmem:[%s5740_s4 + $0xd8] sm:$0xff] }
  0x3a   :  { %4773 = vmatprep.subr.bf16.mxu1 %v4897_v3  ;;  %v4819_v36 = vpack.c.bf16 %v1395_v35, %v1394_v33 }
  0x3b   :  { %4429 = vmatmul.mubr.msk.f32.vlgmr.msra.gmra.mrb[12].mxu0 %vm135_vm1, %v5102_v46 }
  0x3c   :  { %4440 = vmatmul.mubr.msk.f32.vlgmr.msra.gmra.mrb[12].mxu1 %vm135_vm1, %v5108_v48  ;;  %4769 = vmatpush3.bf16.msra.mxu0 %v4768_v40 }
  0x3d   :  { %4775 = vmatpush3.bf16.msra.mxu1 %v4774_v41  ;;  %4770 = vmatprep.subr.bf16.mxu0 %v4897_v3 }
  0x3e   :  { %4776 = vmatprep.subr.bf16.mxu1 %v4897_v3  ;;  %4450 = vmatprep.mubr.msk.f32.mxu0 %vm4898_vm0, %v4899_v11 }
  0x3f   :  { %4461 = vmatprep.mubr.msk.f32.mxu1 %vm4898_vm0, %v4899_v11 }
  0x40   :  { %4772 = vmatpush3.bf16.msra.mxu0 %v4771_v47 }
  0x41   :  { %4778 = vmatpush3.bf16.msra.mxu1 %v4777_v49  ;;  %4779 = vmatprep.subr.bf16.mxu0 %v4897_v3 }
  0x42   :  { %4785 = vmatprep.subr.bf16.mxu1 %v4897_v3 }
  0x43   :  { %4451 = vmatmul.mubr.msk.f32.vlgmr.msra.gmra.mrb[14].mxu0 %vm135_vm1, %v5148_v60 }
  0x44   :  { %4462 = vmatmul.mubr.msk.f32.vlgmr.msra.gmra.mrb[14].mxu1 %vm135_vm1, %v5154_v62  ;;  %4472 = vmatprep.mubr.msk.f32.mxu0 %vm4898_vm0, %v4899_v11 }
  0x45   :  { %4787 = vmatpush3.bf16.msra.mxu1 %v4786_v52  ;;  %4483 = vmatprep.mubr.msk.f32.mxu1 %vm4898_vm0, %v4899_v11 }
  0x46   :  { %4788 = vmatprep.subr.bf16.mxu1 %v4897_v3  ;;  %4781 = vmatpush3.bf16.msra.mxu0 %v4780_v59 }
  0x47   :  { %4782 = vmatprep.subr.bf16.mxu0 %v4897_v3 }
  0x49   :  { %4790 = vmatpush3.bf16.msra.mxu1 %v4789_v55 }
  0x4a   :  { %4797 = vmatprep.subr.bf16.mxu1 %v4897_v3  ;;  %4784 = vmatpush3.bf16.msra.mxu0 %v4783_v2 }
  0x4b   :  { %4791 = vmatprep.subr.bf16.mxu0 %v4897_v3 }
  0x4c   :  { %4484 = vmatmul.mubr.msk.f32.vlgmr.msra.gmra.mrb[16].mxu1 %vm135_vm1, %v5016_v20  ;;  %v1382_v20 = vld [vmem:[%s5740_s4 + $0x70] sm:$0xff] }
  0x4d   :  { %4799 = vmatpush3.bf16.msra.mxu1 %v4798_v63  ;;  %4505 = vmatprep.mubr.msk.f32.mxu1 %vm4898_vm0, %v4899_v11  ;;  %v4801_v5 = vpack.c.bf16 %v1383_v4, %v1382_v20  ;;  %v4032_v63 = vld [vmem:[%s5741_s5 + $0x1] ss:$0 sm:$0xff]  ;;  %v4033_v4 = vld [vmem:[%s5741_s5 + $0x2] ss:$0 sm:$0xff] }
  0x4e   :  { %4800 = vmatprep.subr.bf16.mxu1 %v4897_v3  ;;  %4473 = vmatmul.mubr.msk.f32.vlgmr.msra.gmra.mrb[16].mxu0 %vm135_vm1, %v5010_v18  ;;  %v4795_v18 = vpack.c.bf16 %v1379_v14, %v1378_v13  ;;  %v4051_v14 = vld [vmem:[%s5742_s6 + $0x4] ss:$0 sm:$0xff] }
  0x4f   :  { %4793 = vmatpush3.bf16.msra.mxu0 %v4792_v9  ;;  %4494 = vmatprep.mubr.msk.f32.mxu0 %vm4898_vm0, %v4899_v11 }
  0x50   :  { %4794 = vmatprep.subr.bf16.mxu0 %v4897_v3 }
  0x51   :  { %4802 = vmatpush3.bf16.msra.mxu1 %v4801_v5 }
  0x52   :  { %4809 = vmatprep.subr.bf16.mxu1 %v4897_v3 }
  0x53   :  { %4796 = vmatpush3.bf16.msra.mxu0 %v4795_v18 }
  0x54   :  { %4506 = vmatmul.mubr.msk.f32.vlgmr.msra.gmra.mrb[18].mxu1 %vm135_vm1, %v5062_v34  ;;  %v1391_v34 = vld [vmem:[%s5740_s4 + $0xb8] sm:$0xff]  ;;  %4803 = vmatprep.subr.bf16.mxu0 %v4897_v3 }
  0x55   :  { %4811 = vmatpush3.bf16.msra.mxu1 %v4810_v12  ;;  %v4813_v16 = vpack.c.bf16 %v1391_v34, %v1390_v15  ;;  %4527 = vmatprep.mubr.msk.f32.mxu1 %vm4898_vm0, %v4899_v11  ;;  %v4052_v15 = vld [vmem:[%s5742_s6 + $0x5] ss:$0 sm:$0xff]  ;;  %v4035_v34 = vld [vmem:[%s5741_s5 + $0x4] ss:$0 sm:$0xff] }
  0x56   :  { %4812 = vmatprep.subr.bf16.mxu1 %v4897_v3  ;;  %4495 = vmatmul.mubr.msk.f32.vlgmr.msra.gmra.mrb[18].mxu0 %vm135_vm1, %v5056_v32  ;;  %v4807_v32 = vpack.c.bf16 %v1387_v26, %v1386_v25  ;;  %v4053_v26 = vld [vmem:[%s5742_s6 + $0x6] ss:$0 sm:$0xff] }
  0x57   :  { %4805 = vmatpush3.bf16.msra.mxu0 %v4804_v22  ;;  %4516 = vmatprep.mubr.msk.f32.mxu0 %vm4898_vm0, %v4899_v11 }
  0x58   :  { %4806 = vmatprep.subr.bf16.mxu0 %v4897_v3 }
  0x59   :  { %4814 = vmatpush3.bf16.msra.mxu1 %v4813_v16 }
  0x5a   :  { %4821 = vmatprep.subr.bf16.mxu1 %v4897_v3 }
  0x5b   :  { %4808 = vmatpush3.bf16.msra.mxu0 %v4807_v32 }
  0x5c   :  { %4528 = vmatmul.mubr.msk.f32.vlgmr.msra.gmra.mrb[20].mxu1 %vm135_vm1, %v5108_v48  ;;  %v1399_v48 = vld [vmem:[%s5740_s4 + $0xf8] sm:$0xff]  ;;  %4815 = vmatprep.subr.bf16.mxu0 %v4897_v3  ;;  %s4900_s4 = smov [#allocation2]  }
  0x5d   :  { %4823 = vmatpush3.bf16.msra.mxu1 %v4822_v24  ;;  %v4825_v28 = vpack.c.bf16 %v1399_v48, %v1398_v27  ;;  %4549 = vmatprep.mubr.msk.f32.mxu1 %vm4898_vm0, %v4899_v11  ;;  %v4054_v27 = vld [vmem:[%s5742_s6 + $0x7] ss:$0 sm:$0xff]  ;;  %v4037_v48 = vld [vmem:[%s5741_s5 + $0x6] ss:$0 sm:$0xff]  ;;  %s4020_s20 = sshll.u32 %s4900_s4, 4  ;;  %s4021_s20 = int_to_ptr.vmem [resolvable:$true] %s4020_s20 }
  0x5e   :  { %4824 = vmatprep.subr.bf16.mxu1 %v4897_v3  ;;  %4517 = vmatmul.mubr.msk.f32.vlgmr.msra.gmra.mrb[20].mxu0 %vm135_vm1, %v5102_v46  ;;  %s4873_s2 = scalar_lea.vmem %s4021_s20, 256  ;;  %p4878_p1 = scmp.lt.s32.totalorder %s4021_s20, %s4021_s20 }
  0x5f   :  { %4817 = vmatpush3.bf16.msra.mxu0 %v4816_v31  ;;  %4538 = vmatprep.mubr.msk.f32.mxu0 %vm4898_vm0, %v4899_v11  ;;  %v4038_v31 = vld [vmem:[%s5741_s5 + $0x7] ss:$0 sm:$0xff]  ;;  %p4874_p0 = scmp.ne.s32.totalorder %s4021_s20, %s4873_s2  ;;  %p4879_p2 = scmp.lt.s32.totalorder %s4873_s2, %s4873_s2 }
  0x60   :  { %4818 = vmatprep.subr.bf16.mxu0 %v4897_v3 }
  0x61   :  { %4826 = vmatpush3.bf16.msra.mxu1 %v4825_v28  ;;  %p4880_p3 = por %p4879_p2, %p4878_p1 }
  0x62   :  { %4552 = vmatprep.subr.mxu1 %v4899_v11 }
  0x63   :  { %4820 = vmatpush3.bf16.msra.mxu0 %v4819_v36  ;;  %p4881_p4 = pnand %p4880_p3, %p4874_p0 }
  0x64   :  { %4550 = vmatmul.mubr.msk.f32.vlgmr.msra.gmra.mrb[22].mxu1 %vm135_vm1, %v5154_v62  ;;  %4562 = vmatprep.subr.mxu0 %v4899_v11 }
  0x65   :  { %4554 = vmatprep.mubr.msk.f32.mxu1 %vm4898_vm0, %v4899_v11 }
  0x66   :  { %4539 = vmatmul.mubr.msk.f32.vlgmr.msra.gmra.mrb[22].mxu0 %vm135_vm1, %v5148_v60 }
  0x67   :  { %4564 = vmatprep.mubr.msk.f32.mxu0 %vm4898_vm0, %v4899_v11 }
  0xde   :  { %v205_v3 = vpop.f32.mrb[0].mxu0 }
  0xdf   :  { %v4298_v46 = vpop.f32.mrb[1].mxu0  ;;  %v278_v62 = vpop.f32.mrb[0].mxu1  ;;  %v206_v61 = vadd.f32 %v4031_v54, %v205_v3 }
  0xe0   :  { %v4309_v37 = vpop.f32.mrb[1].mxu1  ;;  %v279_v20 = vadd.f32 %v4032_v63, %v278_v62  ;;  %v4064_v46 = vld [vmem:[%s5743_s7 + $0x1] ss:$0 sm:$0xff] }
  0xe6   :  { %v351_v38 = vpop.f32.mrb[2].mxu0 }
  0xe7   :  { %v4320_v39 = vpop.f32.mrb[3].mxu0  ;;  %v424_v40 = vpop.f32.mrb[2].mxu1  ;;  %v352_v12 = vadd.f32 %v4033_v4, %v351_v38 }
  0xe8   :  { %v4331_v41 = vpop.f32.mrb[3].mxu1  ;;  %v425_v13 = vadd.f32 %v4034_v8, %v424_v40  ;;  %v4063_v39 = vld [vmem:[%s5743_s7] ss:$0 sm:$0xff] }
  0xee   :  { %v497_v42 = vpop.f32.mrb[4].mxu0 }
  0xef   :  { %v4342_v43 = vpop.f32.mrb[5].mxu0  ;;  %v570_v44 = vpop.f32.mrb[4].mxu1  ;;  %v498_v24 = vadd.f32 %v4035_v34, %v497_v42 }
  0xf0   :  { %v4353_v45 = vpop.f32.mrb[5].mxu1  ;;  %v571_v25 = vadd.f32 %v4036_v21, %v570_v44 }
  0xf6   :  { %v5441_v47 = vpop.f32.mrb[6].mxu0 }
  0xf7   :  { %v4364_v49 = vpop.f32.mrb[7].mxu0  ;;  %v5443_v50 = vpop.f32.mrb[6].mxu1  ;;  %v644_v36 = vadd.f32 %v4037_v48, %v5441_v47 }
  0xf8   :  { %v4375_v60 = vpop.f32.mrb[7].mxu1  ;;  %v717_v3 = vadd.f32 %v4038_v31, %v5443_v50 }
  0xfe   :  { %v874_v52 = vpop.f32.mrb[8].mxu0 }
  0xff   :  { %v875_v55 = vadd.f32 %v4047_v51, %v874_v52  ;;  %v4386_v56 = vpop.f32.mrb[9].mxu0  ;;  %v944_v57 = vpop.f32.mrb[8].mxu1 }
 0x100   :  { %v4397_v58 = vpop.f32.mrb[9].mxu1  ;;  %v945_v59 = vadd.f32 %v4048_v53, %v944_v57 }
 0x101   :  { %4553 = vmatpush3.xpose.msk.msra.mxu1 %vm2016_vm2, %v875_v55 }
 0x102   :  { %4557 = vmatprep.subr.mxu1 %v4899_v11 }
 0x104   :  { %4555 = vmatmul.mubr.msk.f32.vlgmr.msra.gmra.mrb[24].mxu1 %vm2016_vm2, %v206_v61 }
 0x105   :  { %4558 = vmatpush3.xpose.msk.msra.mxu1 %vm2016_vm2, %v945_v59  ;;  %4559 = vmatprep.mubr.msk.f32.mxu1 %vm4898_vm0, %v4899_v11 }
 0x106   :  { %v1014_v2 = vpop.f32.mrb[10].mxu0  ;;  %4567 = vmatprep.subr.mxu1 %v4899_v11 }
 0x107   :  { %v1015_v5 = vadd.f32 %v4049_v0, %v1014_v2  ;;  %v1084_v6 = vpop.f32.mrb[10].mxu1  ;;  %v4408_v7 = vpop.f32.mrb[11].mxu0 }
 0x108   :  { %v1085_v9 = vadd.f32 %v4050_v1, %v1084_v6  ;;  %4560 = vmatmul.mubr.msk.f32.vlgmr.msra.gmra.mrb[26].mxu1 %vm2016_vm2, %v279_v20  ;;  %v4419_v10 = vpop.f32.mrb[11].mxu1 }
 0x109   :  { %4563 = vmatpush3.xpose.msk.msra.mxu0 %vm2016_vm2, %v1015_v5  ;;  %4569 = vmatprep.mubr.msk.f32.mxu1 %vm4898_vm0, %v4899_v11 }
 0x10a   :  { %4568 = vmatpush3.xpose.msk.msra.mxu1 %vm2016_vm2, %v1085_v9  ;;  %4572 = vmatprep.subr.mxu0 %v4899_v11 }
 0x10b   :  { %4577 = vmatprep.subr.mxu1 %v4899_v11 }
 0x10c   :  { %4565 = vmatmul.mubr.msk.f32.vlgmr.msra.gmra.mrb[24].mxu0 %vm2016_vm2, %v352_v12 }
 0x10d   :  { %4570 = vmatmul.mubr.msk.f32.vlgmr.msra.gmra.mrb[28].mxu1 %vm2016_vm2, %v425_v13  ;;  %4574 = vmatprep.mubr.msk.f32.mxu0 %vm4898_vm0, %v4899_v11 }
 0x10e   :  { %v1154_v18 = vpop.f32.mrb[12].mxu0  ;;  %4579 = vmatprep.mubr.msk.f32.mxu1 %vm4898_vm0, %v4899_v11 }
 0x10f   :  { %v1155_v16 = vadd.f32 %v4051_v14, %v1154_v18  ;;  %v1224_v17 = vpop.f32.mrb[12].mxu1  ;;  %v4430_v19 = vpop.f32.mrb[13].mxu0 }
 0x110   :  { %v1225_v22 = vadd.f32 %v4052_v15, %v1224_v17  ;;  %v4441_v23 = vpop.f32.mrb[13].mxu1 }
 0x111   :  { %4573 = vmatpush3.xpose.msk.msra.mxu0 %vm2016_vm2, %v1155_v16 }
 0x112   :  { %4578 = vmatpush3.xpose.msk.msra.mxu1 %vm2016_vm2, %v1225_v22  ;;  %4582 = vmatprep.subr.mxu0 %v4899_v11 }
 0x113   :  { %4587 = vmatprep.subr.mxu1 %v4899_v11 }
 0x114   :  { %4575 = vmatmul.mubr.msk.f32.vlgmr.msra.gmra.mrb[26].mxu0 %vm2016_vm2, %v498_v24 }
 0x115   :  { %4580 = vmatmul.mubr.msk.f32.vlgmr.msra.gmra.mrb[30].mxu1 %vm2016_vm2, %v571_v25  ;;  %4584 = vmatprep.mubr.msk.f32.mxu0 %vm4898_vm0, %v4899_v11 }
 0x116   :  { %v1294_v32 = vpop.f32.mrb[14].mxu0  ;;  %4589 = vmatprep.mubr.msk.f32.mxu1 %vm4898_vm0, %v4899_v11 }
 0x117   :  { %v1295_v28 = vadd.f32 %v4053_v26, %v1294_v32  ;;  %v1364_v29 = vpop.f32.mrb[14].mxu1  ;;  %v4452_v30 = vpop.f32.mrb[15].mxu0 }
 0x118   :  { %v1365_v33 = vadd.f32 %v4054_v27, %v1364_v29  ;;  %v4463_v35 = vpop.f32.mrb[15].mxu1 }
 0x119   :  { %4583 = vmatpush3.xpose.msk.msra.mxu0 %vm2016_vm2, %v1295_v28 }
 0x11a   :  { %4588 = vmatpush3.xpose.msk.msra.mxu1 %vm2016_vm2, %v1365_v33  ;;  %4592 = vmatprep.subr.mxu0 %v4899_v11 }
 0x11b   :  { %4597 = vmatprep.subr.mxu1 %v4899_v11 }
 0x11c   :  { %4585 = vmatmul.mubr.msk.f32.vlgmr.msra.gmra.mrb[28].mxu0 %vm2016_vm2, %v644_v36 }
 0x11d   :  { %4590 = vmatmul.mubr.msk.f32.vlgmr.msra.gmra.mrb[32].mxu1 %vm2016_vm2, %v717_v3  ;;  %4594 = vmatprep.mubr.msk.f32.mxu0 %vm4898_vm0, %v4899_v11 }
 0x11e   :  { %4599 = vmatprep.mubr.msk.f32.mxu1 %vm4898_vm0, %v4899_v11 }
 0x11f   :  { %v1592_v62 = vpop.f32.mrb[16].mxu1 }
 0x120   :  { %v1593_v37 = vadd.f32 %v4064_v46, %v1592_v62  ;;  %v4485_v38 = vpop.f32.mrb[17].mxu1 }
 0x121   :  { %v1522_v40 = vpop.f32.mrb[16].mxu0 }
 0x122   :  { %4598 = vmatpush3.msra.mxu1 %v1593_v37  ;;  %v1523_v41 = vadd.f32 %v4063_v39, %v1522_v40  ;;  %v4474_v42 = vpop.f32.mrb[17].mxu0 }
 0x123   :  { %4607 = vmatprep.subr.mxu1 %v4899_v11 }
 0x124   :  { %4593 = vmatpush3.msra.mxu0 %v1523_v41 }
 0x125   :  { %4602 = vmatprep.subr.mxu0 %v4899_v11 }
 0x127   :  { %v5542_v43 = vpop.f32.mrb[18].mxu1 }
 0x128   :  { %v4507_v44 = vpop.f32.mrb[19].mxu1 }
 0x129   :  { %v5545_v45 = vpop.f32.mrb[18].mxu0 }
 0x12a   :  { %v4496_v47 = vpop.f32.mrb[19].mxu0 }
 0x12f   :  { %v5547_v49 = vpop.f32.mrb[20].mxu1 }
 0x130   :  { %v4529_v50 = vpop.f32.mrb[21].mxu1 }
 0x131   :  { %v5549_v60 = vpop.f32.mrb[20].mxu0 }
 0x132   :  { %v4518_v52 = vpop.f32.mrb[21].mxu0 }
 0x137   :  { %v5551_v51 = vpop.f32.mrb[22].mxu1 }
 0x138   :  { %v4551_v53 = vpop.f32.mrb[23].mxu1 }
 0x139   :  { %v5553_v54 = vpop.f32.mrb[22].mxu0 }
 0x13a   :  { %v4540_v55 = vpop.f32.mrb[23].mxu0 }
 0x1d7   :  { %v2089_v56 = vpop.f32.mrb[24].mxu1 }
 0x1d8   :  { %v2625_v57 = vmul.f32 0.35355338, %v2089_v56  ;;  %v4556_v58 = vpop.f32.mrb[25].mxu1 }
 0x1da   :  { %v2633_v59 = vsel %vm2016_vm2, %v2625_v57, -inf }
 0x1db   :  { %2634 = vmax.xlane.f32.xlu0 %v2633_v59  ;;  %v2165_v61 = vpop.f32.mrb[26].mxu1 }
 0x1dc   :  { %v2626_v63 = vmul.f32 0.35355338, %v2165_v61  ;;  %v4561_v0 = vpop.f32.mrb[27].mxu1 }
 0x1de   :  { %v2636_v1 = vsel %vm2016_vm2, %v2626_v63, -inf }
 0x1df   :  { %2637 = vmax.xlane.f32.xlu0 %v2636_v1  ;;  %v2241_v20 = vpop.f32.mrb[24].mxu0 }
 0x1e0   :  { %v2627_v2 = vmul.f32 0.35355338, %v2241_v20  ;;  %v2317_v4 = vpop.f32.mrb[28].mxu1  ;;  %v4566_v5 = vpop.f32.mrb[25].mxu0 }
 0x1e1   :  { %v4571_v6 = vpop.f32.mrb[29].mxu1  ;;  %v2628_v7 = vmul.f32 0.35355338, %v2317_v4 }
 0x1e2   :  { %v2639_v8 = vsel %vm2016_vm2, %v2627_v2, -inf }
 0x1e3   :  { %2640 = vmax.xlane.f32.xlu1 %v2639_v8  ;;  %v2642_v9 = vsel %vm2016_vm2, %v2628_v7, -inf }
 0x1e7   :  { %2643 = vmax.xlane.f32.xlu1 %v2642_v9  ;;  %v2393_v10 = vpop.f32.mrb[26].mxu0 }
 0x1e8   :  { %v2469_v12 = vpop.f32.mrb[30].mxu1  ;;  %v2629_v13 = vmul.f32 0.35355338, %v2393_v10  ;;  %v4576_v14 = vpop.f32.mrb[27].mxu0 }
 0x1e9   :  { %v2630_v15 = vmul.f32 0.35355338, %v2469_v12  ;;  %v4581_v18 = vpop.f32.mrb[31].mxu1 }
 0x1ea   :  { %v2645_v34 = vsel %vm2016_vm2, %v2629_v13, -inf }
 0x1eb   :  { %v2648_v16 = vsel %vm2016_vm2, %v2630_v15, -inf  ;;  %2646 = vmax.xlane.f32.xlu0 %v2645_v34 }
 0x1ec   :  { %2649 = vmax.xlane.f32.xlu1 %v2648_v16  ;;  %v4066_v16 = vld [vmem:[%s5743_s7 + $0x3] ss:$0 sm:$0xff] }
 0x1ef   :  { %v2545_v17 = vpop.f32.mrb[28].mxu0 }
 0x1f0   :  { %v2631_v19 = vmul.f32 0.35355338, %v2545_v17  ;;  %v2621_v21 = vpop.f32.mrb[32].mxu1  ;;  %v4586_v22 = vpop.f32.mrb[29].mxu0 }
 0x1f1   :  { %v2632_v23 = vmul.f32 0.35355338, %v2621_v21  ;;  %v4591_v24 = vpop.f32.mrb[33].mxu1  ;;  %v1733_v22 = vadd.f32 %v4066_v16, %v5542_v43  ;;  %v4068_v43 = vld [vmem:[%s5743_s7 + $0x5] ss:$0 sm:$0xff] }
 0x1f2   :  { %v2651_v25 = vsel %vm2016_vm2, %v2631_v19, -inf }
 0x1f3   :  { %v2654_v26 = vsel %vm2016_vm2, %v2632_v23, -inf  ;;  %2652 = vmax.xlane.f32.xlu0 %v2651_v25 }
 0x1f4   :  { %2655 = vmax.xlane.f32.xlu1 %v2654_v26 }
 0x268   :  { %v2635_v27 = vpop.xlane.xlu0 %2634 }
 0x269   :  { %v2657_v32 = vsub.f32 %v2625_v57, %v2635_v27 }
 0x26b   :  { %v2665_v48 = vmul.f32 1.442695, %v2657_v32 }
 0x26c   :  { %v2638_v28 = vpop.xlane.xlu0 %2637 }
 0x26d   :  { %4841 = vpow2.f32 %v2665_v48  ;;  %v2658_v29 = vsub.f32 %v2626_v63, %v2638_v28  ;;  %v1873_v28 = vadd.f32 %v4068_v43, %v5547_v49 }
 0x26f   :  { %v2667_v30 = vmul.f32 1.442695, %v2658_v29 }
 0x270   :  { %v2641_v31 = vpop.xlane.xlu1 %2640 }
 0x271   :  { %4843 = vpow2.f32 %v2667_v30  ;;  %v2659_v33 = vsub.f32 %v2627_v2, %v2641_v31  ;;  %v4070_v31 = vld [vmem:[%s5743_s7 + $0x7] ss:$0 sm:$0xff] }
 0x273   :  { %v2669_v35 = vmul.f32 1.442695, %v2659_v33 }
 0x274   :  { %v2644_v36 = vpop.xlane.xlu1 %2643 }
 0x275   :  { %4845 = vpow2.f32 %v2669_v35  ;;  %v2660_v3 = vsub.f32 %v2628_v7, %v2644_v36 }
 0x277   :  { %v4842_v46 = vpop.eup %4841  ;;  %v2671_v62 = vmul.f32 1.442695, %v2660_v3  ;;  %v2013_v3 = vadd.f32 %v4070_v31, %v5551_v51 }
 0x278   :  { %v2647_v37 = vpop.xlane.xlu0 %2646  ;;  %v2681_v38 = vsel %vm2016_vm2, %v4842_v46, 0.0 }
 0x279   :  { %4847 = vpow2.f32 %v2671_v62  ;;  %v2650_v39 = vpop.xlane.xlu1 %2649  ;;  %v2661_v40 = vsub.f32 %v2629_v13, %v2647_v37  ;;  %2682 = vadd.xlane.f32.xlu0 %v2681_v38  ;;  %v4065_v13 = vld [vmem:[%s5743_s7 + $0x2] ss:$0 sm:$0xff]  ;;  %v3306_v38 = vld [vmem:[%s5744_s8 + $0x8] sm:$0xff] }
 0x27a   :  { %v2662_v41 = vsub.f32 %v2630_v15, %v2650_v39  ;;  %v1663_v34 = vadd.f32 %v4065_v13, %v5545_v45  ;;  %v4067_v45 = vld [vmem:[%s5743_s7 + $0x4] ss:$0 sm:$0xff]  ;;  %v3307_v39 = vld [vmem:[%s5744_s8 + $0x10] sm:$0xff]  ;;  %v3921_v13 = vld [vmem:[%s5736_s0 + $0x8] sm:$0xff] }
 0x27b   :  { %v4844_v42 = vpop.eup %4843  ;;  %v2673_v44 = vmul.f32 1.442695, %v2661_v40  ;;  %v1803_v26 = vadd.f32 %v4067_v45, %v5549_v60  ;;  %v4069_v60 = vld [vmem:[%s5743_s7 + $0x6] ss:$0 sm:$0xff] }
 0x27c   :  { %v2675_v47 = vmul.f32 1.442695, %v2662_v41  ;;  %v2684_v50 = vsel %vm2016_vm2, %v4844_v42, 0.0  ;;  %v1943_v35 = vadd.f32 %v4069_v60, %v5553_v54  ;;  %v3305_v37 = vld [vmem:[%s5744_s8] sm:$0xff] }
 0x27d   :  { %4849 = vpow2.f32 %v2673_v44  ;;  %2685 = vadd.xlane.f32.xlu1 %v2684_v50  ;;  %v3309_v50 = vld [vmem:[%s5744_s8 + $0x20] sm:$0xff] }
 0x27e   :  { %4851 = vpow2.f32 %v2675_v47 }
 0x27f   :  { %v4846_v52 = vpop.eup %4845 }
 0x280   :  { %v2653_v53 = vpop.xlane.xlu0 %2652  ;;  %v2687_v55 = vsel %vm2016_vm2, %v4846_v52, 0.0 }
 0x281   :  { %v2656_v56 = vpop.xlane.xlu1 %2655  ;;  %v2663_v57 = vsub.f32 %v2631_v19, %v2653_v53  ;;  %2688 = vadd.xlane.f32.xlu0 %v2687_v55  ;;  %v3310_v55 = vld [vmem:[%s5744_s8 + $0x28] sm:$0xff] }
 0x282   :  { %v2664_v58 = vsub.f32 %v2632_v23, %v2656_v56 }
 0x283   :  { %v4848_v59 = vpop.eup %4847  ;;  %v2677_v61 = vmul.f32 1.442695, %v2663_v57 }
 0x284   :  { %v2679_v63 = vmul.f32 1.442695, %v2664_v58  ;;  %v2690_v0 = vsel %vm2016_vm2, %v4848_v59, 0.0  ;;  %v3922_v58 = vld [vmem:[%s5746_s10] sm:$0xff] }
 0x285   :  { %4853 = vpow2.f32 %v2677_v61  ;;  %2691 = vadd.xlane.f32.xlu1 %v2690_v0  ;;  %v3311_v61 = vld [vmem:[%s5744_s8 + $0x30] sm:$0xff]  ;;  %v3312_v0 = vld [vmem:[%s5744_s8 + $0x38] sm:$0xff] }
 0x286   :  { %4855 = vpow2.f32 %v2679_v63 }
 0x287   :  { %v5567_v1 = vpop.eup %4849 }
 0x288   :  { %v5569_v20 = vpop.eup %4851  ;;  %v2693_v2 = vsel %vm2016_vm2, %v5567_v1, 0.0 }
 0x289   :  { %v2696_v4 = vsel %vm2016_vm2, %v5569_v20, 0.0  ;;  %2694 = vadd.xlane.f32.xlu0 %v2693_v2 }
 0x28a   :  { %2697 = vadd.xlane.f32.xlu1 %v2696_v4 }
 0x28f   :  { %v5575_v5 = vpop.eup %4853 }
 0x290   :  { %v5577_v6 = vpop.eup %4855  ;;  %v2699_v7 = vsel %vm2016_vm2, %v5575_v5, 0.0 }
 0x291   :  { %v2702_v8 = vsel %vm2016_vm2, %v5577_v6, 0.0  ;;  %2700 = vadd.xlane.f32.xlu0 %v2699_v7 }
 0x292   :  { %2703 = vadd.xlane.f32.xlu1 %v2702_v8 }
 0x306   :  { %v2683_v9 = vpop.xlane.xlu0 %2682 }
 0x307   :  { %4857 = vrcp.f32 %v2683_v9  ;;  %v3920_v9 = vld [vmem:[%s5736_s0] sm:$0xff] }
 0x30a   :  { %v2686_v10 = vpop.xlane.xlu1 %2685 }
 0x30b   :  { %4859 = vrcp.f32 %v2686_v10 }
 0x30e   :  { %v2689_v12 = vpop.xlane.xlu0 %2688 }
 0x30f   :  { %4861 = vrcp.f32 %v2689_v12 }
 0x311   :  { %v4858_v14 = vpop.eup %4857 }
 0x312   :  { %v2713_v15 = vmul.f32 %v4858_v14, %v4842_v46  ;;  %v2692_v18 = vpop.xlane.xlu1 %2691 }
 0x313   :  { %4863 = vrcp.f32 %v2692_v18 }
 0x314   :  { %4595 = vmatmul.mubr.msk.f32.vlgmr.msra.gmra.mrb[30].mxu0 %vm2016_vm2, %v2713_v15 }
 0x315   :  { %v4860_v17 = vpop.eup %4859  ;;  %4603 = vmatpush3.msra.mxu0 %v1663_v34  ;;  %4604 = vmatprep.mubr.msk.f32.mxu0 %vm4898_vm0, %v4899_v11 }
 0x316   :  { %v2714_v19 = vmul.f32 %v4860_v17, %v4844_v42  ;;  %v2695_v21 = vpop.xlane.xlu0 %2694  ;;  %4612 = vmatprep.subr.mxu0 %v4899_v11  ;;  %v3308_v42 = vld [vmem:[%s5744_s8 + $0x18] sm:$0xff] }
 0x317   :  { %v2698_v23 = vpop.xlane.xlu1 %2697  ;;  %4865 = vrcp.f32 %v2695_v21 }
 0x318   :  { %4867 = vrcp.f32 %v2698_v23  ;;  %4600 = vmatmul.mubr.msk.f32.vlgmr.msra.gmra.mrb[34].mxu1 %vm2016_vm2, %v2714_v19 }
 0x319   :  { %v4862_v24 = vpop.eup %4861  ;;  %4608 = vmatpush3.msra.mxu1 %v1733_v22  ;;  %4609 = vmatprep.mubr.msk.f32.mxu1 %vm4898_vm0, %v4899_v11 }
 0x31a   :  { %v2715_v25 = vmul.f32 %v4862_v24, %v4846_v52  ;;  %4617 = vmatprep.subr.mxu1 %v4899_v11 }
 0x31c   :  { %4605 = vmatmul.mubr.msk.f32.vlgmr.msra.gmra.mrb[32].mxu0 %vm2016_vm2, %v2715_v25 }
 0x31d   :  { %v4864_v27 = vpop.eup %4863  ;;  %4613 = vmatpush3.msra.mxu0 %v1803_v26  ;;  %4614 = vmatprep.mubr.msk.f32.mxu0 %vm4898_vm0, %v4899_v11 }
 0x31e   :  { %v2716_v32 = vmul.f32 %v4864_v27, %v4848_v59  ;;  %v2701_v48 = vpop.xlane.xlu0 %2700  ;;  %4622 = vmatprep.subr.mxu0 %v4899_v11  ;;  %v3923_v59 = vld [vmem:[%s5746_s10 + $0x8] sm:$0xff] }
 0x31f   :  { %v2704_v29 = vpop.xlane.xlu1 %2703  ;;  %4869 = vrcp.f32 %v2701_v48 }
 0x320   :  { %4871 = vrcp.f32 %v2704_v29  ;;  %4610 = vmatmul.mubr.msk.f32.vlgmr.msra.gmra.mrb[36].mxu1 %vm2016_vm2, %v2716_v32 }
 0x321   :  { %v4866_v30 = vpop.eup %4865  ;;  %4618 = vmatpush3.msra.mxu1 %v1873_v28  ;;  %4619 = vmatprep.mubr.msk.f32.mxu1 %vm4898_vm0, %v4899_v11 }
 0x322   :  { %v4868_v33 = vpop.eup %4867  ;;  %v2717_v49 = vmul.f32 %v4866_v30, %v5567_v1  ;;  %4627 = vmatprep.subr.mxu1 %v4899_v11  ;;  %v4827_v1 = vpack.c.bf16 %v3923_v59, %v3922_v58 }
 0x323   :  { %v2718_v36 = vmul.f32 %v4868_v33, %v5569_v20 }
 0x324   :  { %4615 = vmatmul.mubr.msk.f32.vlgmr.msra.gmra.mrb[34].mxu0 %vm2016_vm2, %v2717_v49 }
 0x325   :  { %4620 = vmatmul.mubr.msk.f32.vlgmr.msra.gmra.mrb[38].mxu1 %vm2016_vm2, %v2718_v36  ;;  %4623 = vmatpush3.msra.mxu0 %v1943_v35 }
 0x326   :  { %4628 = vmatpush3.msra.mxu1 %v2013_v3  ;;  %4624 = vmatprep.mubr.msk.f32.mxu0 %vm4898_vm0, %v4899_v11 }
 0x327   :  { %4629 = vmatprep.mubr.msk.f32.mxu1 %vm4898_vm0, %v4899_v11  ;;  %4632 = vmatprep.subr.mxu0 %v4899_v11 }
 0x328   :  { %4637 = vmatprep.subr.mxu1 %v4899_v11 }
 0x329   :  { %v4870_v54 = vpop.eup %4869 }
 0x32a   :  { %v4872_v46 = vpop.eup %4871  ;;  %v2719_v51 = vmul.f32 %v4870_v54, %v5575_v5  ;;  %v3924_v5 = vld [vmem:[%s5746_s10 + $0x10] sm:$0xff] }
 0x32b   :  { %v2720_v62 = vmul.f32 %v4872_v46, %v5577_v6  ;;  %v3925_v6 = vld [vmem:[%s5746_s10 + $0x18] sm:$0xff] }
 0x32c   :  { %4625 = vmatmul.mubr.msk.f32.vlgmr.msra.gmra.mrb[36].mxu0 %vm2016_vm2, %v2719_v51  ;;  %v4831_v7 = vpack.c.bf16 %v3925_v6, %v3924_v5  ;;  %v4111_v51 = vld [vmem:[%s5745_s9] ss:$0 sm:$0xff] }
 0x32d   :  { %4630 = vmatmul.mubr.msk.f32.vlgmr.msra.gmra.mrb[40].mxu1 %vm2016_vm2, %v2720_v62  ;;  %4634 = vmatprep.mubr.msk.f32.mxu0 %vm4898_vm0, %v4899_v11 }
 0x32e   :  { %4639 = vmatprep.mubr.msk.f32.mxu1 %vm4898_vm0, %v4899_v11  ;;  %4633 = vmatpush3.msra.mxu0 %v3305_v37 }
 0x32f   :  { %4642 = vmatprep.subr.mxu0 %v4899_v11  ;;  %4638 = vmatpush3.msra.mxu1 %v3306_v38 }
 0x330   :  { %4647 = vmatprep.subr.mxu1 %v4899_v11 }
 0x3e7   :  { %v2790_v40 = vpop.f32.mrb[30].mxu0 }
 0x3e8   :  { %v4596_v41 = vpop.f32.mrb[31].mxu0  ;;  %4635 = vmatmul.mubr.msk.f32.vlgmr.msra.gmra.mrb[38].mxu0 %vm2016_vm2, %v2790_v40 }
 0x3e9   :  { %4643 = vmatpush3.msra.mxu0 %v3307_v39  ;;  %4644 = vmatprep.mubr.msk.f32.mxu0 %vm4898_vm0, %v4899_v11 }
 0x3ea   :  { %4652 = vmatprep.subr.mxu0 %v4899_v11 }
 0x3eb   :  { %v2863_v44 = vpop.f32.mrb[34].mxu1 }
 0x3ec   :  { %v4601_v47 = vpop.f32.mrb[35].mxu1  ;;  %4640 = vmatmul.mubr.msk.f32.vlgmr.msra.gmra.mrb[42].mxu1 %vm2016_vm2, %v2863_v44 }
 0x3ed   :  { %4648 = vmatpush3.msra.mxu1 %v3308_v42  ;;  %4649 = vmatprep.mubr.msk.f32.mxu1 %vm4898_vm0, %v4899_v11 }
 0x3ee   :  { %4657 = vmatprep.subr.mxu1 %v4899_v11 }
 0x3ef   :  { %v2936_v52 = vpop.f32.mrb[32].mxu0 }
 0x3f0   :  { %v4606_v53 = vpop.f32.mrb[33].mxu0  ;;  %4645 = vmatmul.mubr.msk.f32.vlgmr.msra.gmra.mrb[40].mxu0 %vm2016_vm2, %v2936_v52 }
 0x3f1   :  { %4653 = vmatpush3.msra.mxu0 %v3309_v50  ;;  %4654 = vmatprep.mubr.msk.f32.mxu0 %vm4898_vm0, %v4899_v11 }
 0x3f2   :  { %4662 = vmatprep.subr.mxu0 %v4899_v11 }
 0x3f3   :  { %v3009_v56 = vpop.f32.mrb[36].mxu1 }
 0x3f4   :  { %v4611_v57 = vpop.f32.mrb[37].mxu1  ;;  %4650 = vmatmul.mubr.msk.f32.vlgmr.msra.gmra.mrb[44].mxu1 %vm2016_vm2, %v3009_v56 }
 0x3f5   :  { %4658 = vmatpush3.msra.mxu1 %v3310_v55  ;;  %4659 = vmatprep.mubr.msk.f32.mxu1 %vm4898_vm0, %v4899_v11 }
 0x3f6   :  { %4667 = vmatprep.subr.mxu1 %v4899_v11 }
 0x3f7   :  { %v3082_v63 = vpop.f32.mrb[34].mxu0 }
 0x3f8   :  { %v3155_v20 = vpop.f32.mrb[38].mxu1  ;;  %v4616_v2 = vpop.f32.mrb[35].mxu0  ;;  %4655 = vmatmul.mubr.msk.f32.vlgmr.msra.gmra.mrb[42].mxu0 %vm2016_vm2, %v3082_v63 }
 0x3f9   :  { %v4621_v4 = vpop.f32.mrb[39].mxu1  ;;  %4660 = vmatmul.mubr.msk.f32.vlgmr.msra.gmra.mrb[46].mxu1 %vm2016_vm2, %v3155_v20  ;;  %4663 = vmatpush3.msra.mxu0 %v3311_v61 }
 0x3fa   :  { %4664 = vmatprep.mubr.msk.f32.mxu0 %vm4898_vm0, %v4899_v11  ;;  %4668 = vmatpush3.msra.mxu1 %v3312_v0 }
 0x3fb   :  { %4669 = vmatprep.mubr.msk.f32.mxu1 %vm4898_vm0, %v4899_v11  ;;  %4828 = vmatprep.subr.bf16.mxu0 %v4827_v1 }
 0x3ff   :  { %v3228_v8 = vpop.f32.mrb[36].mxu0 }
 0x400   :  { %v3301_v10 = vpop.f32.mrb[40].mxu1  ;;  %v4626_v12 = vpop.f32.mrb[37].mxu0  ;;  %4665 = vmatmul.mubr.msk.f32.vlgmr.msra.gmra.mrb[44].mxu0 %vm2016_vm2, %v3228_v8 }
 0x401   :  { %v4631_v11 = vpop.f32.mrb[41].mxu1  ;;  %4670 = vmatmul.mubr.msk.f32.vlgmr.msra.gmra.mrb[48].mxu1 %vm2016_vm2, %v3301_v10  ;;  %4830 = vmatpush3.bf16.msra.mxu0 %v4827_v1 }
 0x402   :  { %4832 = vmatprep.subr.bf16.mxu0 %v4831_v7  ;;  %4680 = vmatprep.mubr.msk.f32.mxu0 %vm135_vm1, %v3920_v9 }
 0x405   :  { %4834 = vmatpush3.bf16.msra.mxu0 %v4831_v7 }
 0x408   :  { %4681 = vmatmul.mubr.msk.f32.vlgmr.msra.gmra.mrb[46].mxu0 %vm135_vm1, %v3921_v13 }
 0x4bb   :  { %v3382_v14 = vpop.f32.mrb[38].mxu0 }
 0x4bc   :  { %v4636_v15 = vpop.f32.mrb[39].mxu0  ;;  %v3897_v34 = vsel %vm135_vm1, %v3382_v14, 0.0 }
 0x4bf   :  { %v3455_v18 = vpop.f32.mrb[42].mxu1 }
 0x4c0   :  { %v3898_v16 = vsel %vm135_vm1, %v3455_v18, 0.0  ;;  %v4641_v17 = vpop.f32.mrb[43].mxu1 }
 0x4c1   :  { %v3899_v19 = vadd.f32 %v3898_v16, %v3897_v34 }
 0x4c3   :  { %v3528_v21 = vpop.f32.mrb[40].mxu0 }
 0x4c4   :  { %v3900_v22 = vsel %vm135_vm1, %v3528_v21, 0.0  ;;  %v4646_v23 = vpop.f32.mrb[41].mxu0 }
 0x4c5   :  { %v3901_v45 = vadd.f32 %v3900_v22, %v3899_v19 }
 0x4c7   :  { %v3601_v24 = vpop.f32.mrb[44].mxu1 }
 0x4c8   :  { %v3902_v25 = vsel %vm135_vm1, %v3601_v24, 0.0  ;;  %v4651_v26 = vpop.f32.mrb[45].mxu1 }
 0x4c9   :  { %v3903_v43 = vadd.f32 %v3902_v25, %v3901_v45 }
 0x4cb   :  { %v3674_v27 = vpop.f32.mrb[42].mxu0  ;;  %v3918_v38 = vadd.f32 %v4111_v51, %v3903_v43 }
 0x4cc   :  { %v3904_v32 = vsel %vm135_vm1, %v3674_v27, 0.0  ;;  %v3747_v48 = vpop.f32.mrb[46].mxu1  ;;  %v4656_v28 = vpop.f32.mrb[43].mxu0 }
 0x4cd   :  { %v3905_v29 = vsel %vm135_vm1, %v3747_v48, 0.0  ;;  %v4661_v60 = vpop.f32.mrb[47].mxu1 }
 0x4ce   :  { %v3906_v30 = vadd.f32 %v3905_v29, %v3904_v32 }
 0x4d3   :  { %v3820_v31 = vpop.f32.mrb[44].mxu0 }
 0x4d4   :  { %v3907_v33 = vsel %vm135_vm1, %v3820_v31, 0.0  ;;  %v3893_v49 = vpop.f32.mrb[48].mxu1  ;;  %v4666_v35 = vpop.f32.mrb[45].mxu0 }
 0x4d5   :  { %v3908_v36 = vadd.f32 %v3907_v33, %v3906_v30  ;;  %v4671_v3 = vpop.f32.mrb[49].mxu1  ;;  %v3909_v54 = vsel %vm135_vm1, %v3893_v49, 0.0 }
 0x4d7   :  { %v3910_v46 = vadd.f32 %v3909_v54, %v3908_v36 }
 0x4d9   :  { %v3919_v62 = vadd.f32 %v4111_v51, %v3910_v46 }
 0x4db   :  { %v4682_v37 = vpop.f32.mrb[46].mxu0 }
 0x4dc   :  { %v4008_v39 = vsub.f32 %v4682_v37, %v3919_v62  ;;  %v3998_v40 = vpop.f32.mrb[47].mxu0 }
 0x4dd   :  { %v4007_v41 = vsub.f32 %v3998_v40, %v3918_v38 }
 0x4de   :  { %v4010_v42 = vand.u32 2147483647, %v4008_v39 }
 0x4df   :  { %v4009_v44 = vand.u32 2147483647, %v4007_v41 }
 0x4e0   :  { %v4012_v47 = vadd.f32 %v4010_v42, %v3919_v62 }
 0x4e1   :  { %v4011_v50 = vadd.f32 %v4009_v44, %v3918_v38 }
 0x4e2   :  { %4014 = vst.msk [vmem:[#allocation2 + $0x8] sm:$0xff] %vm135_vm1, %v4012_v47 }
 0x4e3   :  { %4013 = vst.msk [vmem:[#allocation2] sm:$0xff] %vm135_vm1, %v4011_v50 }
 0x4e4   :  { %4884 = shalt.err (!%p4881_p4)
}
 0x4e5   :  { %s4885_s22 = scalar_lea.hbm %s5747_s11, 256 }
 0x4e6   :  { %p4886_p5 = scmp.ne.s32.totalorder %s5747_s11, %s4885_s22  ;;  %p4889_p6 = scmp.lt.u32.totalorder %s4885_s22, %s5747_s11 }
 0x4e8   :  { %p4891_p7 = pnand %p4889_p6, %p4886_p5 }
 0x4ea   :  { %4894 = shalt.err (!%p4891_p7)
}
 0x4eb   :  { %s4901_s5 = smov 128   ;;  %s4902_s6 = smov 8  }
 0x4ec   :  { %4026 = dma.vmem_to_hbm [thread:$0]  %s4021_s20, 256, %s5747_s11, [#allocation3], %s4901_s5, %s4901_s5, %s4902_s6  }
 0x4ed   :  { %4895 = dma.done.wait [#allocation3], 256  }
 0x4ee   :  { %4896 = vsyncadd [#allocation3], 4294967040 }
 0x4ef   :  { %4030 = vsyncpa [#allocation3], 1 }

</bundles_post_ra>
